<compile_context>
chip_gen: v7x
topology: tpu7x:2x2x1
jax: 0.10.0
libtpu: 0.0.40
codegen_flags: <defaults>
</compile_context>

<pallas_src>
import numpy as np
import jax
import jax.numpy as jnp
from jax.experimental import pallas as pl
from jax.experimental.pallas import tpu as pltpu

STATE_DIM = 3
ACTION_DIM = 3
H1 = 128
H2 = 64

IN_ROWS = 8          # packed input slab sublanes: 0-2 x, 3 ones, 4-6 eps, 7 zero
ONES_ROW = 3
EPS_ROW0 = 4
HEAD_ROWS = 8        # fused head output sublanes: 0-2 mean, 3 zero, 4-6 log_std, 7 zero
OUT_ROWS = 4         # packed output slab sublanes: 0-2 action, 3 log_pi
LOGPI_ROW = 3

LOG2 = float(np.log(2.0))
HALF_LOG_2PI = 0.5 * float(np.log(2.0 * np.pi))


def _round_up(x, m):
    return ((x + m - 1) // m) * m


def sac_actor_kernel(in_ref, w1_ref, w2_ref, b2_ref, wh_ref, bh_ref,
                     gain_ref, off_ref, out_ref):
    inp = in_ref[...]                                                     # (8, TB)

    # ---- MLP trunk (features x batch layout). b1 is folded into w1^T via the constant-1.0
    #      sublane of the slab; eps sublanes hit zero weight columns and are inert. ----
    h1 = jnp.maximum(
        jnp.dot(w1_ref[...], inp, preferred_element_type=jnp.float32), 0.0)      # (128, TB)
    h2 = jnp.maximum(
        jnp.dot(w2_ref[...], h1, preferred_element_type=jnp.float32) + b2_ref[...], 0.0)  # (64, TB)

    # ---- fused mean / log_std heads: one (8, 64) @ (64, TB) matmul ----
    ms = jnp.dot(wh_ref[...], h2, preferred_element_type=jnp.float32) + bh_ref[...]       # (8, TB)

    mean = ms[:OUT_ROWS, :]                                               # (4, TB), row 3 = 0
    log_std = jnp.clip(ms[OUT_ROWS:, :], -20.0, 2.0)                      # (4, TB), row 3 = 0
    eps = inp[EPS_ROW0:, :]                                               # (4, TB), row 3 = 0
    std = jnp.exp(log_std)                                                # pad row -> 1

    # ---- reparameterized sample (eps == 0 reproduces deterministic=True) ----
    a = mean + std * eps                                                  # pad row -> 0

    # ---- Normal(mean, std).log_prob(a) with z = (a - mean)/std = eps ----
    log_prob = -0.5 * eps * eps - log_std - HALF_LOG_2PI                  # pad row -> -HALF_LOG_2PI

    # ---- tanh-squash correction and tanh from one shared exp(-2|a|) ----
    t = jnp.exp(-2.0 * jnp.abs(a))                                        # in (0, 1]
    softplus = jnp.maximum(-2.0 * a, 0.0) + jnp.log(1.0 + t)              # softplus(-2a)
    corr = 2.0 * (LOG2 - a - softplus)                                    # pad row -> 0

    # The single zero-padded row contributes exactly -HALF_LOG_2PI; add the constant back
    # instead of building an iota/compare/select mask.
    log_pi = jnp.sum(log_prob - corr, axis=0, keepdims=True) + HALF_LOG_2PI   # (1, TB)

    # tanh(a) = sign(a) * (1 - t) / (1 + t); reciprocal on the EUP + one Newton refinement.
    denom = 1.0 + t
    r = pl.reciprocal(denom, approx=True)
    r = r * (2.0 - denom * r)
    sgn = jnp.where(a >= 0.0, 1.0, -1.0)
    act = sgn * (1.0 - t) * r * gain_ref[...] + off_ref[...]              # (4, TB), pad row -> 0

    # packed output: rows 0-2 action, row 3 log_pi
    row = jax.lax.broadcasted_iota(jnp.int32, act.shape, 0)
    out_ref[...] = jnp.where(row < ACTION_DIM, act, log_pi)


def init_params(key):
    """Deterministic PyTorch-default-style init: U(-1/sqrt(fan_in), 1/sqrt(fan_in))."""
    ks = jax.random.split(key, 8)

    def lin(kw, kb, fan_in, fan_out):
        bound = 1.0 / np.sqrt(fan_in)
        w = jax.random.uniform(kw, (fan_in, fan_out), jnp.float32, -bound, bound)
        b = jax.random.uniform(kb, (fan_out,), jnp.float32, -bound, bound)
        return w, b

    w1, b1 = lin(ks[0], ks[1], STATE_DIM, H1)
    w2, b2 = lin(ks[2], ks[3], H1, H2)
    wm, bm = lin(ks[4], ks[5], H2, ACTION_DIM)
    ws, bs = lin(ks[6], ks[7], H2, ACTION_DIM)
    return dict(w1=w1, b1=b1, w2=w2, b2=b2, wm=wm, bm=bm, ws=ws, bs=bs)


def prepare_params(params, a_min, a_max):
    """One-time: transpose + zero-pad weights/biases into the kernel's resident layout.
    All padding entries are exactly zero (kernel correctness relies on it)."""
    f32 = jnp.float32
    # fc1: columns 0-2 = W1^T, column 3 = b1 (bias fold), columns 4-7 = 0 (eps rows inert)
    w1_t = jnp.zeros((H1, IN_ROWS), f32)
    w1_t = w1_t.at[:, :STATE_DIM].set(params["w1"].T)
    w1_t = w1_t.at[:, ONES_ROW].set(params["b1"].astype(f32))
    w2_t = params["w2"].T.astype(f32)                                     # (64, 128)
    b2_t = params["b2"].astype(f32).reshape(H2, 1)                        # (64, 1)

    # fused heads: rows 0-2 mean, rows 4-6 log_std, rows 3 & 7 zero
    wh_t = jnp.zeros((HEAD_ROWS, H2), f32)
    wh_t = wh_t.at[:ACTION_DIM, :].set(params["wm"].T)
    wh_t = wh_t.at[EPS_ROW0:EPS_ROW0 + ACTION_DIM, :].set(params["ws"].T)
    bh_t = jnp.zeros((HEAD_ROWS, 1), f32)
    bh_t = bh_t.at[:ACTION_DIM, 0].set(params["bm"])
    bh_t = bh_t.at[EPS_ROW0:EPS_ROW0 + ACTION_DIM, 0].set(params["bs"])

    off = (jnp.asarray(a_min, f32) + jnp.asarray(a_max, f32)) / 2.0
    gain = jnp.asarray(a_max, f32) - off
    gain_t = jnp.zeros((OUT_ROWS, 1), f32).at[:ACTION_DIM, 0].set(gain)
    off_t = jnp.zeros((OUT_ROWS, 1), f32).at[:ACTION_DIM, 0].set(off)
    return (w1_t, w2_t, b2_t, wh_t, bh_t, gain_t, off_t)


def _choose_tile(batch, tb_max):
    """Batch-lane tile: big enough to amortize grid-step overhead, but at least 2 grid steps
    once B >= 256 so both v7x TensorCores get work."""
    b128 = _round_up(max(batch, 1), 128)
    tb = min(tb_max, b128)
    if b128 >= 2 * 128:
        tb = min(tb, _round_up((b128 + 1) // 2, 128))
    return max(_round_up(tb, 128), 128)


def sac_actor_forward_packed(slab, prepared, tb):
    """Fast path: slab is the packed (8, B_pad) feature-major input (rows 0-2 x^T, row 3 = 1.0,
    rows 4-6 eps^T, row 7 = 0) with B_pad a multiple of tb (tb a multiple of 128).
    Returns the packed (4, B_pad) output (rows 0-2 action, row 3 log_pi)."""
    _, b_pad = slab.shape
    grid = (b_pad // tb,)

    batch_in = pl.BlockSpec((IN_ROWS, tb), lambda i: (0, i))
    batch_out = pl.BlockSpec((OUT_ROWS, tb), lambda i: (0, i))
    resident = lambda shape: pl.BlockSpec(shape, lambda i: (0, 0))   # stays in VMEM across steps

    return pl.pallas_call(
        sac_actor_kernel,
        grid=grid,
        out_shape=jax.ShapeDtypeStruct((OUT_ROWS, b_pad), jnp.float32),
        in_specs=[
            batch_in,                      # packed x / ones / eps slab
            resident((H1, IN_ROWS)),       # w1^T with folded b1
            resident((H2, H1)),            # w2^T
            resident((H2, 1)),             # b2
            resident((HEAD_ROWS, H2)),     # fused head weights
            resident((HEAD_ROWS, 1)),      # fused head biases
            resident((OUT_ROWS, 1)),       # gain
            resident((OUT_ROWS, 1)),       # off
        ],
        out_specs=batch_out,
        compiler_params=pltpu.CompilerParams(
            dimension_semantics=("parallel",)),
    )(slab, *prepared)


def sac_actor_forward(x, eps, prepared, *, tb_max=4096):
    """x: (B, 3) f32 state, eps: (B, 3) f32 standard-normal noise (zeros -> deterministic).
    Returns (a: (B, 3), log_pi: (B, 1))."""
    B = x.shape[0]
    TB = _choose_tile(B, tb_max)
    B_pad = _round_up(B, TB)

    # per-call glue: ONE packed slab (upstream callers can keep this layout and skip it)
    slab = jnp.zeros((IN_ROWS, B_pad), jnp.float32)
    slab = slab.at[:STATE_DIM, :B].set(x.T)
    slab = slab.at[ONES_ROW, :B].set(1.0)
    slab = slab.at[EPS_ROW0:EPS_ROW0 + ACTION_DIM, :B].set(eps.T)

    out = sac_actor_forward_packed(slab, prepared, TB)
    a = out[:ACTION_DIM, :B].T
    log_pi = out[LOGPI_ROW:LOGPI_ROW + 1, :B].T
    return a, log_pi


def reference_forward(x, eps, params, a_min, a_max):
    """Pure-JAX reference matching the PyTorch forward (rsample with given eps)."""
    off = (a_min + a_max) / 2.0
    gain = a_max - off
    h1 = jax.nn.relu(x @ params["w1"] + params["b1"])
    h2 = jax.nn.relu(h1 @ params["w2"] + params["b2"])
    mean = h2 @ params["wm"] + params["bm"]
    log_std = jnp.clip(h2 @ params["ws"] + params["bs"], -20.0, 2.0)
    std = jnp.exp(log_std)
    a = mean + std * eps
    log_prob = -0.5 * ((a - mean) / std) ** 2 - log_std - HALF_LOG_2PI
    log_pi = jnp.sum(log_prob, axis=1, keepdims=True)
    log_pi = log_pi - jnp.sum(2.0 * (LOG2 - a - jax.nn.softplus(-2.0 * a)),
                              axis=1, keepdims=True)
    a_out = jnp.tanh(a) * gain + off
    return a_out, log_pi


if __name__ == "__main__":
    key = jax.random.PRNGKey(0)
    k_params, k_x, k_eps, k_x2, k_eps2 = jax.random.split(key, 5)

    params = init_params(k_params)
    a_min = jnp.zeros((ACTION_DIM,), jnp.float32)
    a_max = jnp.ones((ACTION_DIM,), jnp.float32)
    prepared = prepare_params(params, a_min, a_max)

    # --- test 1: small batch, stochastic path (rsample noise) ---
    B = 8
    x = jax.random.normal(k_x, (B, STATE_DIM), jnp.float32)
    eps = jax.random.normal(k_eps, (B, ACTION_DIM), jnp.float32)
    a, log_pi = sac_actor_forward(x, eps, prepared)
    jax.block_until_ready((a, log_pi))
    a_ref, log_pi_ref = reference_forward(x, eps, params, a_min, a_max)
    np.testing.assert_allclose(np.asarray(a), np.asarray(a_ref), rtol=1e-5, atol=1e-5)
    np.testing.assert_allclose(np.asarray(log_pi), np.asarray(log_pi_ref), rtol=1e-4, atol=1e-4)

    # --- test 2: deterministic path (eps = 0, matches deterministic=True) ---
    a_d, log_pi_d = sac_actor_forward(x, jnp.zeros_like(eps), prepared)
    jax.block_until_ready((a_d, log_pi_d))
    a_dr, log_pi_dr = reference_forward(x, jnp.zeros_like(eps), params, a_min, a_max)
    np.testing.assert_allclose(np.asarray(a_d), np.asarray(a_dr), rtol=1e-5, atol=1e-5)
    np.testing.assert_allclose(np.asarray(log_pi_d), np.asarray(log_pi_dr), rtol=1e-4, atol=1e-4)

    # --- test 3: batch not a multiple of the tile -> multi-step batch grid + padding ---
    B2 = 260
    x2 = jax.random.normal(k_x2, (B2, STATE_DIM), jnp.float32)
    eps2 = jax.random.normal(k_eps2, (B2, ACTION_DIM), jnp.float32)
    a2, log_pi2 = sac_actor_forward(x2, eps2, prepared, tb_max=128)   # grid of 3 batch tiles
    jax.block_until_ready((a2, log_pi2))
    a2_ref, log_pi2_ref = reference_forward(x2, eps2, params, a_min, a_max)
    np.testing.assert_allclose(np.asarray(a2), np.asarray(a2_ref), rtol=1e-5, atol=1e-5)
    np.testing.assert_allclose(np.asarray(log_pi2), np.asarray(log_pi2_ref), rtol=1e-4, atol=1e-4)

    # --- test 4: default adaptive tile (>=2 grid steps once B >= 256) ---
    a3, log_pi3 = sac_actor_forward(x2, eps2, prepared)               # TB=256, grid of 2
    jax.block_until_ready((a3, log_pi3))
    np.testing.assert_allclose(np.asarray(a3), np.asarray(a2_ref), rtol=1e-5, atol=1e-5)
    np.testing.assert_allclose(np.asarray(log_pi3), np.asarray(log_pi2_ref), rtol=1e-4, atol=1e-4)

    print("KERNEL_OK")
</pallas_src>

<mosaic_0001>
module attributes {stable_mosaic.version = 11 : i64} {
  func.func @sac_actor_kernel(%arg0: i32, %arg1: memref<8x128xf32, #tpu.memory_space<vmem>>, %arg2: memref<128x8xf32, #tpu.memory_space<vmem>>, %arg3: memref<64x128xf32, #tpu.memory_space<vmem>>, %arg4: memref<64x1xf32, #tpu.memory_space<vmem>>, %arg5: memref<8x64xf32, #tpu.memory_space<vmem>>, %arg6: memref<8x1xf32, #tpu.memory_space<vmem>>, %arg7: memref<4x1xf32, #tpu.memory_space<vmem>>, %arg8: memref<4x1xf32, #tpu.memory_space<vmem>>, %arg9: memref<4x128xf32, #tpu.memory_space<vmem>>) attributes {dimension_semantics = [#tpu.dimension_semantics<parallel>], iteration_bounds = array<i64: 1>, scalar_prefetch = 0 : i64, scratch_operands = 0 : i64, tpu.core_type = #tpu.core_type<tc>, window_params = [{transform_indices = @transform_0, window_bounds = array<i64: 8, 128>}, {pipeline_mode = #tpu.pipeline_mode<synchronous>, transform_indices = @transform_1, window_bounds = array<i64: 128, 8>}, {pipeline_mode = #tpu.pipeline_mode<synchronous>, transform_indices = @transform_2, window_bounds = array<i64: 64, 128>}, {pipeline_mode = #tpu.pipeline_mode<synchronous>, transform_indices = @transform_3, window_bounds = array<i64: 64, 1>}, {pipeline_mode = #tpu.pipeline_mode<synchronous>, transform_indices = @transform_4, window_bounds = array<i64: 8, 64>}, {pipeline_mode = #tpu.pipeline_mode<synchronous>, transform_indices = @transform_5, window_bounds = array<i64: 8, 1>}, {pipeline_mode = #tpu.pipeline_mode<synchronous>, transform_indices = @transform_6, window_bounds = array<i64: 4, 1>}, {pipeline_mode = #tpu.pipeline_mode<synchronous>, transform_indices = @transform_7, window_bounds = array<i64: 4, 1>}, {transform_indices = @transform_8, window_bounds = array<i64: 4, 128>}]} {
    %c0 = arith.constant 0 : index
    %c0_0 = arith.constant 0 : index
    %0 = vector.load %arg1[%c0, %c0_0] : memref<8x128xf32, #tpu.memory_space<vmem>>, vector<8x128xf32>
    %c0_1 = arith.constant 0 : index
    %c0_2 = arith.constant 0 : index
    %1 = vector.load %arg2[%c0_1, %c0_2] : memref<128x8xf32, #tpu.memory_space<vmem>>, vector<128x8xf32>
    %cst = arith.constant dense<0.000000e+00> : vector<128x128xf32>
    %2 = tpu.matmul %1, %0, %cst {dimension_numbers = #tpu.dot_dimension_numbers<[1], [0], [0], [1], [0, 0, 1, 1], [], []>} : vector<128x8xf32>, vector<8x128xf32>, vector<128x128xf32> -> vector<128x128xf32>
    %cst_3 = arith.constant 0.000000e+00 : f32
    %3 = vector.broadcast %cst_3 : f32 to vector<128x128xf32>
    %4 = arith.maximumf %2, %3 : vector<128x128xf32>
    %c0_4 = arith.constant 0 : index
    %c0_5 = arith.constant 0 : index
    %5 = vector.load %arg3[%c0_4, %c0_5] : memref<64x128xf32, #tpu.memory_space<vmem>>, vector<64x128xf32>
    %cst_6 = arith.constant dense<0.000000e+00> : vector<64x128xf32>
    %6 = tpu.matmul %5, %4, %cst_6 {dimension_numbers = #tpu.dot_dimension_numbers<[1], [0], [0], [1], [0, 0, 1, 1], [], []>} : vector<64x128xf32>, vector<128x128xf32>, vector<64x128xf32> -> vector<64x128xf32>
    %c0_7 = arith.constant 0 : index
    %c0_8 = arith.constant 0 : index
    %7 = vector.load %arg4[%c0_7, %c0_8] : memref<64x1xf32, #tpu.memory_space<vmem>>, vector<64x1xf32>
    %8 = vector.broadcast %7 : vector<64x1xf32> to vector<64x128xf32>
    %9 = arith.addf %6, %8 : vector<64x128xf32>
    %cst_9 = arith.constant 0.000000e+00 : f32
    %10 = vector.broadcast %cst_9 : f32 to vector<64x128xf32>
    %11 = arith.maximumf %9, %10 : vector<64x128xf32>
    %c0_10 = arith.constant 0 : index
    %c0_11 = arith.constant 0 : index
    %12 = vector.load %arg5[%c0_10, %c0_11] : memref<8x64xf32, #tpu.memory_space<vmem>>, vector<8x64xf32>
    %cst_12 = arith.constant dense<0.000000e+00> : vector<8x128xf32>
    %13 = tpu.matmul %12, %11, %cst_12 {dimension_numbers = #tpu.dot_dimension_numbers<[1], [0], [0], [1], [0, 0, 1, 1], [], []>} : vector<8x64xf32>, vector<64x128xf32>, vector<8x128xf32> -> vector<8x128xf32>
    %c0_13 = arith.constant 0 : index
    %c0_14 = arith.constant 0 : index
    %14 = vector.load %arg6[%c0_13, %c0_14] : memref<8x1xf32, #tpu.memory_space<vmem>>, vector<8x1xf32>
    %15 = vector.broadcast %14 : vector<8x1xf32> to vector<8x128xf32>
    %16 = arith.addf %13, %15 : vector<8x128xf32>
    %17 = vector.extract_strided_slice %16 {offsets = [0, 0], sizes = [4, 128], strides = [1, 1]} : vector<8x128xf32> to vector<4x128xf32>
    %18 = vector.extract_strided_slice %16 {offsets = [4, 0], sizes = [4, 128], strides = [1, 1]} : vector<8x128xf32> to vector<4x128xf32>
    %cst_15 = arith.constant -2.000000e+01 : f32
    %cst_16 = arith.constant 2.000000e+00 : f32
    %19 = vector.broadcast %cst_15 : f32 to vector<4x128xf32>
    %20 = arith.maximumf %19, %18 : vector<4x128xf32>
    %21 = vector.broadcast %cst_16 : f32 to vector<4x128xf32>
    %22 = arith.minimumf %21, %20 : vector<4x128xf32>
    %23 = vector.extract_strided_slice %0 {offsets = [4, 0], sizes = [4, 128], strides = [1, 1]} : vector<8x128xf32> to vector<4x128xf32>
    %24 = math.exp %22 : vector<4x128xf32>
    %25 = arith.mulf %24, %23 : vector<4x128xf32>
    %26 = arith.addf %17, %25 : vector<4x128xf32>
    %cst_17 = arith.constant -5.000000e-01 : f32
    %27 = vector.broadcast %cst_17 : f32 to vector<4x128xf32>
    %28 = arith.mulf %27, %23 : vector<4x128xf32>
    %29 = arith.mulf %28, %23 : vector<4x128xf32>
    %30 = arith.subf %29, %22 : vector<4x128xf32>
    %cst_18 = arith.constant 0.918938517 : f32
    %31 = vector.broadcast %cst_18 : f32 to vector<4x128xf32>
    %32 = arith.subf %30, %31 : vector<4x128xf32>
    %33 = math.absf %26 : vector<4x128xf32>
    %cst_19 = arith.constant -2.000000e+00 : f32
    %34 = vector.broadcast %cst_19 : f32 to vector<4x128xf32>
    %35 = arith.mulf %34, %33 : vector<4x128xf32>
    %36 = math.exp %35 : vector<4x128xf32>
    %cst_20 = arith.constant -2.000000e+00 : f32
    %37 = vector.broadcast %cst_20 : f32 to vector<4x128xf32>
    %38 = arith.mulf %37, %26 : vector<4x128xf32>
    %cst_21 = arith.constant 0.000000e+00 : f32
    %39 = vector.broadcast %cst_21 : f32 to vector<4x128xf32>
    %40 = arith.maximumf %38, %39 : vector<4x128xf32>
    %cst_22 = arith.constant 1.000000e+00 : f32
    %41 = vector.broadcast %cst_22 : f32 to vector<4x128xf32>
    %42 = arith.addf %41, %36 : vector<4x128xf32>
    %43 = math.log %42 : vector<4x128xf32>
    %44 = arith.addf %40, %43 : vector<4x128xf32>
    %cst_23 = arith.constant 0.693147182 : f32
    %45 = vector.broadcast %cst_23 : f32 to vector<4x128xf32>
    %46 = arith.subf %45, %26 : vector<4x128xf32>
    %47 = arith.subf %46, %44 : vector<4x128xf32>
    %cst_24 = arith.constant 2.000000e+00 : f32
    %48 = vector.broadcast %cst_24 : f32 to vector<4x128xf32>
    %49 = arith.mulf %48, %47 : vector<4x128xf32>
    %50 = arith.subf %32, %49 : vector<4x128xf32>
    %cst_25 = arith.constant dense<0.000000e+00> : vector<128xf32>
    %51 = vector.multi_reduction <add>, %50, %cst_25 [0] : vector<4x128xf32> to vector<128xf32>
    %52 = vector.shape_cast %51 : vector<128xf32> to vector<1x128xf32>
    %cst_26 = arith.constant 0.918938517 : f32
    %53 = vector.broadcast %cst_26 : f32 to vector<1x128xf32>
    %54 = arith.addf %52, %53 : vector<1x128xf32>
    %cst_27 = arith.constant 1.000000e+00 : f32
    %55 = vector.broadcast %cst_27 : f32 to vector<4x128xf32>
    %56 = arith.addf %55, %36 : vector<4x128xf32>
    %57 = tpu.reciprocal %56 {approx = true} : vector<4x128xf32> -> vector<4x128xf32>
    %58 = arith.mulf %56, %57 : vector<4x128xf32>
    %cst_28 = arith.constant 2.000000e+00 : f32
    %59 = vector.broadcast %cst_28 : f32 to vector<4x128xf32>
    %60 = arith.subf %59, %58 : vector<4x128xf32>
    %61 = arith.mulf %57, %60 : vector<4x128xf32>
    %cst_29 = arith.constant 0.000000e+00 : f32
    %62 = vector.broadcast %cst_29 : f32 to vector<4x128xf32>
    %63 = arith.cmpf oge, %26, %62 : vector<4x128xf32>
    %cst_30 = arith.constant 1.000000e+00 : f32
    %cst_31 = arith.constant -1.000000e+00 : f32
    %64 = vector.broadcast %cst_30 : f32 to vector<4x128xf32>
    %65 = vector.broadcast %cst_31 : f32 to vector<4x128xf32>
    %66 = arith.select %63, %64, %65 : vector<4x128xi1>, vector<4x128xf32>
    %cst_32 = arith.constant 1.000000e+00 : f32
    %67 = vector.broadcast %cst_32 : f32 to vector<4x128xf32>
    %68 = arith.subf %67, %36 : vector<4x128xf32>
    %69 = arith.mulf %66, %68 : vector<4x128xf32>
    %70 = arith.mulf %69, %61 : vector<4x128xf32>
    %c0_33 = arith.constant 0 : index
    %c0_34 = arith.constant 0 : index
    %71 = vector.load %arg7[%c0_33, %c0_34] : memref<4x1xf32, #tpu.memory_space<vmem>>, vector<4x1xf32>
    %72 = vector.broadcast %71 : vector<4x1xf32> to vector<4x128xf32>
    %73 = arith.mulf %70, %72 : vector<4x128xf32>
    %c0_35 = arith.constant 0 : index
    %c0_36 = arith.constant 0 : index
    %74 = vector.load %arg8[%c0_35, %c0_36] : memref<4x1xf32, #tpu.memory_space<vmem>>, vector<4x1xf32>
    %75 = vector.broadcast %74 : vector<4x1xf32> to vector<4x128xf32>
    %76 = arith.addf %73, %75 : vector<4x128xf32>
    %77 = tpu.iota {dimensions = array<i32: 0>} : vector<4x128xi32>
    %c3_i32 = arith.constant 3 : i32
    %78 = vector.broadcast %c3_i32 : i32 to vector<4x128xi32>
    %79 = arith.cmpi slt, %77, %78 : vector<4x128xi32>
    %80 = vector.shape_cast %54 : vector<1x128xf32> to vector<1x128xf32>
    %81 = vector.broadcast %80 : vector<1x128xf32> to vector<4x128xf32>
    %82 = arith.select %79, %76, %81 : vector<4x128xi1>, vector<4x128xf32>
    %c0_37 = arith.constant 0 : index
    %c0_38 = arith.constant 0 : index
    %83 = vector.load %arg9[%c0_37, %c0_38] : memref<4x128xf32, #tpu.memory_space<vmem>>, vector<4x128xf32>
    tpu.vector_store %arg9[%c0_37, %c0_38], %82 {strides = array<i32>} : memref<4x128xf32, #tpu.memory_space<vmem>>, vector<4x128xf32>,
    return
  }
  func.func @transform_0(%arg0: i32) -> (i32, i32) {
    %c0_i32 = arith.constant 0 : i32
    %c0_i32_0 = arith.constant 0 : i32
    return %c0_i32, %arg0 : i32, i32
  }
  func.func @transform_1(%arg0: i32) -> (i32, i32) {
    %c0_i32 = arith.constant 0 : i32
    %c0_i32_0 = arith.constant 0 : i32
    %c0_i32_1 = arith.constant 0 : i32
    return %c0_i32, %c0_i32_0 : i32, i32
  }
  func.func @transform_2(%arg0: i32) -> (i32, i32) {
    %c0_i32 = arith.constant 0 : i32
    %c0_i32_0 = arith.constant 0 : i32
    %c0_i32_1 = arith.constant 0 : i32
    return %c0_i32, %c0_i32_0 : i32, i32
  }
  func.func @transform_3(%arg0: i32) -> (i32, i32) {
    %c0_i32 = arith.constant 0 : i32
    %c0_i32_0 = arith.constant 0 : i32
    %c0_i32_1 = arith.constant 0 : i32
    return %c0_i32, %c0_i32_0 : i32, i32
  }
  func.func @transform_4(%arg0: i32) -> (i32, i32) {
    %c0_i32 = arith.constant 0 : i32
    %c0_i32_0 = arith.constant 0 : i32
    %c0_i32_1 = arith.constant 0 : i32
    return %c0_i32, %c0_i32_0 : i32, i32
  }
  func.func @transform_5(%arg0: i32) -> (i32, i32) {
    %c0_i32 = arith.constant 0 : i32
    %c0_i32_0 = arith.constant 0 : i32
    %c0_i32_1 = arith.constant 0 : i32
    return %c0_i32, %c0_i32_0 : i32, i32
  }
  func.func @transform_6(%arg0: i32) -> (i32, i32) {
    %c0_i32 = arith.constant 0 : i32
    %c0_i32_0 = arith.constant 0 : i32
    %c0_i32_1 = arith.constant 0 : i32
    return %c0_i32, %c0_i32_0 : i32, i32
  }
  func.func @transform_7(%arg0: i32) -> (i32, i32) {
    %c0_i32 = arith.constant 0 : i32
    %c0_i32_0 = arith.constant 0 : i32
    %c0_i32_1 = arith.constant 0 : i32
    return %c0_i32, %c0_i32_0 : i32, i32
  }
  func.func @transform_8(%arg0: i32) -> (i32, i32) {
    %c0_i32 = arith.constant 0 : i32
    %c0_i32_0 = arith.constant 0 : i32
    return %c0_i32, %arg0 : i32, i32
  }
}

</mosaic_0001>

<bundles_post_ra>
// kernel: tpu_custom_call.1
= control target key start
LH: loop header
LB: loop body
LE: loop exit
PB: predicated region body
PF: predicated region fallthrough
CT: control target
= control target key end

     0   :  { %vm47_vm0 = vcmask 64512   ;;  %s1029_s0 = inlined_call_operand.vmem [shape: f32[8,128], index: 0, kind: input, shape index: {}]   ;;  %s1030_s1 = inlined_call_operand.vmem [shape: f32[128,8], index: 1, kind: input, shape index: {}]   ;;  %s1031_s2 = inlined_call_operand.vmem [shape: f32[64,128], index: 2, kind: input, shape index: {}]   ;;  %s1032_s3 = inlined_call_operand.vmem [shape: f32[64,1], index: 3, kind: input, shape index: {}]   ;;  %s1033_s4 = inlined_call_operand.vmem [shape: f32[8,64], index: 4, kind: input, shape index: {}]   ;;  %s1034_s5 = inlined_call_operand.vmem [shape: f32[8,1], index: 5, kind: input, shape index: {}]   ;;  %s1035_s6 = inlined_call_operand.vmem [shape: f32[4,1], index: 6, kind: input, shape index: {}]   ;;  %s1036_s7 = inlined_call_operand.vmem [shape: f32[4,1], index: 7, kind: input, shape index: {}]   ;;  %s1037_s8 = inlined_call_operand.hbm [shape: f32[4,128], index: 8, kind: output, shape index: {}]  }
   0x1   :  { %v886_v0 = vld [vmem:[%s1029_s0] sm:$0xff]  ;;  %v32_v2 = vld [vmem:[%s1030_s1 + $0x8] sm:$0xff]  ;;  %v33_v3 = vld [vmem:[%s1030_s1 + $0x10] sm:$0xff] }
   0x2   :  { %v31_v1 = vld [vmem:[%s1030_s1] sm:$0xff]  ;;  %659 = vmatprep.subr.mxu0 %v886_v0  ;;  %v34_v4 = vld [vmem:[%s1030_s1 + $0x18] sm:$0xff] }
   0x3   :  { %661 = vmatprep.mubr.msk.f32.mxu0 %vm47_vm0, %v31_v1  ;;  %660 = vmatpush3.msra.mxu0 %v886_v0  ;;  %v35_v5 = vld [vmem:[%s1030_s1 + $0x20] sm:$0xff] }
   0x4   :  { %662 = vmatmul.mubr.msk.f32.vlgmr.msra.gmra.mrb[0].mxu0 %vm47_vm0, %v32_v2 }
   0x5   :  { %664 = vmatprep.mubr.msk.f32.mxu0 %vm47_vm0, %v33_v3 }
   0x6   :  { %13 = vsyncpa [#allocation3], 0  ;;  %v36_v6 = vld [vmem:[%s1030_s1 + $0x28] sm:$0xff]  ;;  %v37_v7 = vld [vmem:[%s1030_s1 + $0x30] sm:$0xff]  ;;  %v832_v19 = vmov 0   ;;  %vm834_vm1 = vmmov 0  }
   0x7   :  { %v38_v8 = vld [vmem:[%s1030_s1 + $0x38] sm:$0xff]  ;;  %v39_v9 = vld [vmem:[%s1030_s1 + $0x40] sm:$0xff]  ;;  %v40_v10 = vld [vmem:[%s1030_s1 + $0x48] sm:$0xff]  ;;  %798 = vset.pattern.permute.xlu0 %v832_v19  ;;  %799 = vset.pattern.permute.xlu1 %v832_v19  ;;  %vm433_vm2 = vcmask 523264   ;;  %vm540_vm3 = vcmask 1043456  }
   0x8   :  { %665 = vmatmul.mubr.msk.f32.gmra.mrb[2].mxu0 %vm47_vm0, %v34_v4  ;;  %v41_v11 = vld [vmem:[%s1030_s1 + $0x50] sm:$0xff]  ;;  %v42_v12 = vld [vmem:[%s1030_s1 + $0x58] sm:$0xff]  ;;  %v43_v13 = vld [vmem:[%s1030_s1 + $0x60] sm:$0xff] }
   0x9   :  { %667 = vmatprep.mubr.msk.f32.mxu0 %vm47_vm0, %v35_v5  ;;  %v44_v14 = vld [vmem:[%s1030_s1 + $0x68] sm:$0xff]  ;;  %v45_v15 = vld [vmem:[%s1030_s1 + $0x70] sm:$0xff]  ;;  %v46_v16 = vld [vmem:[%s1030_s1 + $0x78] sm:$0xff] }
   0xa   :  { %v257_v17 = vld [vmem:[%s1031_s2] sm:$0xff]  ;;  %v267_v20 = vld [vmem:[%s1032_s3 + $0x10] sm:$0xff]  ;;  %v266_v21 = vld [vmem:[%s1032_s3 + $0x8] sm:$0xff] }
   0xb   :  { %717 = vmatprep.mubr.f32.mxu1 %v257_v17  ;;  %v265_v18 = vld [vmem:[%s1032_s3] sm:$0xff]  ;;  %285 = vperm.xlu1 %799, %v267_v20   ;;  %v268_v22 = vld [vmem:[%s1032_s3 + $0x18] sm:$0xff]  ;;  %v270_v24 = vld [vmem:[%s1032_s3 + $0x28] sm:$0xff] }
   0xc   :  { %668 = vmatmul.mubr.msk.f32.gmra.mrb[4].mxu0 %vm47_vm0, %v36_v6  ;;  %275 = vperm.xlu0 %798, %v265_v18   ;;  %v269_v23 = vld [vmem:[%s1032_s3 + $0x20] sm:$0xff]  ;;  %v271_v25 = vld [vmem:[%s1032_s3 + $0x30] sm:$0xff]  ;;  %v272_v26 = vld [vmem:[%s1032_s3 + $0x38] sm:$0xff] }
   0xd   :  { %670 = vmatprep.mubr.msk.f32.mxu0 %vm47_vm0, %v37_v7  ;;  %v427_v27 = vld [vmem:[%s1034_s5] sm:$0xff]  ;;  %v258_v7 = vld [vmem:[%s1031_s2 + $0x8] sm:$0xff] }
   0xe   :  { %v558_v28 = vld [vmem:[%s1035_s6] sm:$0xf] }
   0xf   :  { %290 = vperm.xlu1 %799, %v268_v22   ;;  %v565_v29 = vld [vmem:[%s1036_s7] sm:$0xf] }
  0x10   :  { %671 = vmatmul.mubr.msk.f32.gmra.mrb[6].mxu0 %vm47_vm0, %v38_v8  ;;  %280 = vperm.xlu0 %798, %v266_v21   ;;  %v259_v8 = vld [vmem:[%s1031_s2 + $0x10] sm:$0xff] }
  0x11   :  { %673 = vmatprep.mubr.msk.f32.mxu0 %vm47_vm0, %v39_v9  ;;  %v260_v9 = vld [vmem:[%s1031_s2 + $0x18] sm:$0xff] }
  0x13   :  { %300 = vperm.xlu1 %799, %v270_v24  }
  0x14   :  { %674 = vmatmul.mubr.msk.f32.gmra.mrb[8].mxu0 %vm47_vm0, %v40_v10  ;;  %295 = vperm.xlu0 %798, %v269_v23   ;;  %v261_v10 = vld [vmem:[%s1031_s2 + $0x20] sm:$0xff] }
  0x15   :  { %676 = vmatprep.mubr.msk.f32.mxu0 %vm47_vm0, %v41_v11  ;;  %v262_v11 = vld [vmem:[%s1031_s2 + $0x28] sm:$0xff] }
  0x17   :  { %310 = vperm.xlu1 %799, %v272_v26  }
  0x18   :  { %677 = vmatmul.mubr.msk.f32.gmra.mrb[10].mxu0 %vm47_vm0, %v42_v12  ;;  %305 = vperm.xlu0 %798, %v271_v25   ;;  %v263_v12 = vld [vmem:[%s1031_s2 + $0x30] sm:$0xff] }
  0x19   :  { %679 = vmatprep.mubr.msk.f32.mxu0 %vm47_vm0, %v43_v13  ;;  %v264_v13 = vld [vmem:[%s1031_s2 + $0x38] sm:$0xff] }
  0x1b   :  { %561 = vperm.xlu1 %799, %v558_v28  }
  0x1c   :  { %680 = vmatmul.mubr.msk.f32.gmra.mrb[12].mxu0 %vm47_vm0, %v44_v14  ;;  %430 = vperm.xlu0 %798, %v427_v27   ;;  %v833_v14 = vmov 0.0|0.0  }
  0x1d   :  { %682 = vmatprep.mubr.msk.f32.mxu0 %vm47_vm0, %v45_v15  ;;  %780 = vmatprep.subr.bf16.mxu0 %v833_v14  ;;  %v835_v15 = vmov 0.0  }
  0x20   :  { %683 = vmatmul.mubr.msk.f32.gmra.mrb[14].mxu0 %vm47_vm0, %v46_v16  ;;  %568 = vperm.xlu0 %798, %v565_v29  }
  0x21   :  { %745 = vmatprep.mubr.msk.f32.mxu0 %vm834_vm1, %v835_v15 }
  0x8a   :  { %v286_v17 = vpop.permute.xlu1 %285 }
  0x8b   :  { %v276_v16 = vpop.permute.xlu0 %275 }
  0x8e   :  { %v291_v19 = vpop.permute.xlu1 %290 }
  0x8f   :  { %v281_v18 = vpop.permute.xlu0 %280 }
  0x92   :  { %v301_v29 = vpop.permute.xlu1 %300 }
  0xd7   :  { %v663_v30 = vpop.f32.mrb[0].mxu0 }
  0xd8   :  { %v242_v31 = vmax.f32 %v663_v30, 0.0  ;;  %v162_v32 = vpop.f32.mrb[1].mxu0 }
  0xd9   :  { %v241_v33 = vmax.f32 %v162_v32, 0.0  ;;  %v296_v32 = vpop.permute.xlu0 %295 }
  0xdb   :  { %v666_v34 = vpop.f32.mrb[2].mxu0  ;;  %v748_v35 = vpack.c.bf16 %v242_v31, %v241_v33 }
  0xdc   :  { %v244_v36 = vmax.f32 %v666_v34, 0.0  ;;  %v172_v37 = vpop.f32.mrb[3].mxu0 }
  0xdd   :  { %v243_v38 = vmax.f32 %v172_v37, 0.0  ;;  %749 = vmatprep.subr.bf16.mxu1 %v748_v35 }
  0xde   :  { %751 = vmatpush3.bf16.msra.mxu1 %v748_v35 }
  0xdf   :  { %v752_v39 = vpack.c.bf16 %v244_v36, %v243_v38  ;;  %v669_v40 = vpop.f32.mrb[4].mxu0 }
  0xe0   :  { %v246_v41 = vmax.f32 %v669_v40, 0.0  ;;  %v182_v42 = vpop.f32.mrb[5].mxu0 }
  0xe1   :  { %v245_v43 = vmax.f32 %v182_v42, 0.0  ;;  %753 = vmatprep.subr.bf16.mxu1 %v752_v39 }
  0xe2   :  { %755 = vmatpush3.bf16.msra.mxu1 %v752_v39 }
  0xe3   :  { %v756_v44 = vpack.c.bf16 %v246_v41, %v245_v43  ;;  %v672_v45 = vpop.f32.mrb[6].mxu0  ;;  %v311_v41 = vpop.permute.xlu1 %310 }
  0xe4   :  { %v248_v46 = vmax.f32 %v672_v45, 0.0  ;;  %v192_v47 = vpop.f32.mrb[7].mxu0 }
  0xe5   :  { %v247_v48 = vmax.f32 %v192_v47, 0.0  ;;  %757 = vmatprep.subr.bf16.mxu1 %v756_v44 }
  0xe6   :  { %759 = vmatpush3.bf16.msra.mxu1 %v756_v44  ;;  %v306_v44 = vpop.permute.xlu0 %305 }
  0xe7   :  { %v760_v49 = vpack.c.bf16 %v248_v46, %v247_v48  ;;  %v675_v50 = vpop.f32.mrb[8].mxu0 }
  0xe8   :  { %v250_v51 = vmax.f32 %v675_v50, 0.0  ;;  %v202_v52 = vpop.f32.mrb[9].mxu0 }
  0xe9   :  { %v249_v53 = vmax.f32 %v202_v52, 0.0  ;;  %761 = vmatprep.subr.bf16.mxu1 %v760_v49  ;;  %v426_v52 = vld [vmem:[%s1033_s4] sm:$0xff]  ;;  %s837_s4 = smov [#allocation2]  }
  0xea   :  { %763 = vmatpush3.bf16.msra.mxu1 %v760_v49  ;;  %s583_s25 = sshll.u32 %s837_s4, 4  ;;  %s584_s25 = int_to_ptr.vmem [resolvable:$true] %s583_s25 }
  0xeb   :  { %v764_v54 = vpack.c.bf16 %v250_v51, %v249_v53  ;;  %v678_v55 = vpop.f32.mrb[10].mxu0  ;;  %v431_v53 = vpop.permute.xlu0 %430  ;;  %s808_s26 = scalar_lea.vmem %s584_s25, 64  ;;  %p813_p1 = scmp.lt.s32.totalorder %s584_s25, %s584_s25 }
  0xec   :  { %v252_v56 = vmax.f32 %v678_v55, 0.0  ;;  %v212_v57 = vpop.f32.mrb[11].mxu0  ;;  %p809_p0 = scmp.ne.s32.totalorder %s584_s25, %s808_s26  ;;  %p814_p2 = scmp.lt.s32.totalorder %s808_s26, %s808_s26 }
  0xed   :  { %v251_v58 = vmax.f32 %v212_v57, 0.0  ;;  %765 = vmatprep.subr.bf16.mxu1 %v764_v54 }
  0xee   :  { %767 = vmatpush3.bf16.msra.mxu1 %v764_v54  ;;  %p815_p3 = por %p814_p2, %p813_p1 }
  0xef   :  { %v768_v59 = vpack.c.bf16 %v252_v56, %v251_v58  ;;  %v681_v60 = vpop.f32.mrb[12].mxu0 }
  0xf0   :  { %v254_v61 = vmax.f32 %v681_v60, 0.0  ;;  %v222_v62 = vpop.f32.mrb[13].mxu0  ;;  %p816_p4 = pnand %p815_p3, %p809_p0 }
  0xf1   :  { %v253_v63 = vmax.f32 %v222_v62, 0.0  ;;  %769 = vmatprep.subr.bf16.mxu1 %v768_v59 }
  0xf2   :  { %771 = vmatpush3.bf16.msra.mxu1 %v768_v59 }
  0xf3   :  { %v772_v1 = vpack.c.bf16 %v254_v61, %v253_v63  ;;  %v684_v2 = vpop.f32.mrb[14].mxu0 }
  0xf4   :  { %v256_v3 = vmax.f32 %v684_v2, 0.0  ;;  %v232_v4 = vpop.f32.mrb[15].mxu0 }
  0xf5   :  { %v255_v5 = vmax.f32 %v232_v4, 0.0  ;;  %773 = vmatprep.subr.bf16.mxu1 %v772_v1 }
  0xf6   :  { %775 = vmatpush3.bf16.msra.mxu1 %v772_v1 }
  0xf7   :  { %v776_v6 = vpack.c.bf16 %v256_v3, %v255_v5 }
  0xf9   :  { %777 = vmatprep.subr.bf16.mxu1 %v776_v6 }
  0xfa   :  { %779 = vmatpush3.bf16.msra.mxu1 %v776_v6  ;;  %v516_v6 = vmul.f32 -0.5, %v886_v0 }
  0xfd   :  { %718 = vmatmul.mubr.f32.vlgmr.msra.gmra.mrb[0].mxu1 %v258_v7 }
  0xfe   :  { %720 = vmatprep.mubr.f32.mxu1 %v259_v8 }
 0x101   :  { %721 = vmatmul.mubr.f32.gmra.mrb[2].mxu1 %v260_v9  ;;  %v517_v9 = vmul.f32 %v516_v6, %v886_v0 }
 0x102   :  { %723 = vmatprep.mubr.f32.mxu1 %v261_v10 }
 0x105   :  { %724 = vmatmul.mubr.f32.gmra.mrb[4].mxu1 %v262_v11 }
 0x106   :  { %726 = vmatprep.mubr.f32.mxu1 %v263_v12 }
 0x109   :  { %727 = vmatmul.mubr.f32.gmra.mrb[6].mxu1 %v264_v13 }
 0x1d0   :  { %v719_v20 = vpop.f32.mrb[0].mxu1 }
 0x1d1   :  { %v385_v21 = vadd.f32 %v719_v20, %v281_v18  ;;  %v379_v22 = vpop.f32.mrb[1].mxu1 }
 0x1d2   :  { %v380_v23 = vadd.f32 %v379_v22, %v276_v16 }
 0x1d3   :  { %v419_v24 = vmax.f32 %v385_v21, 0.0 }
 0x1d4   :  { %v418_v25 = vmax.f32 %v380_v23, 0.0  ;;  %v722_v26 = vpop.f32.mrb[2].mxu1 }
 0x1d5   :  { %v395_v27 = vadd.f32 %v722_v26, %v291_v19  ;;  %v389_v28 = vpop.f32.mrb[3].mxu1 }
 0x1d6   :  { %v781_v30 = vpack.c.bf16 %v419_v24, %v418_v25  ;;  %v390_v31 = vadd.f32 %v389_v28, %v286_v17 }
 0x1d7   :  { %v421_v33 = vmax.f32 %v395_v27, 0.0  ;;  %v836_v27 = vmov -1.0  }
 0x1d8   :  { %v420_v34 = vmax.f32 %v390_v31, 0.0  ;;  %v725_v35 = vpop.f32.mrb[4].mxu1  ;;  %782 = vmatpush3.bf16.msra.mxu0 %v781_v30  ;;  %v572_v31 = vlaneseq }
 0x1d9   :  { %v405_v36 = vadd.f32 %v725_v35, %v301_v29  ;;  %v399_v37 = vpop.f32.mrb[5].mxu1  ;;  %783 = vmatprep.subr.bf16.mxu0 %v833_v14  ;;  %v562_v35 = vpop.permute.xlu1 %561 }
 0x1da   :  { %v784_v38 = vpack.c.bf16 %v421_v33, %v420_v34  ;;  %v400_v39 = vadd.f32 %v399_v37, %v296_v32 }
 0x1db   :  { %v423_v40 = vmax.f32 %v405_v36, 0.0  ;;  %v573_v36 = vshrl.u32 %v572_v31, 7 }
 0x1dc   :  { %v422_v42 = vmax.f32 %v400_v39, 0.0  ;;  %v728_v43 = vpop.f32.mrb[6].mxu1  ;;  %785 = vmatpush3.bf16.msra.mxu0 %v784_v38 }
 0x1dd   :  { %v415_v45 = vadd.f32 %v728_v43, %v311_v41  ;;  %v409_v46 = vpop.f32.mrb[7].mxu1  ;;  %786 = vmatprep.subr.bf16.mxu0 %v833_v14  ;;  %vm574_vm5 = vcmp.lt.s32.totalorder %v573_v36, 3 }
 0x1de   :  { %v787_v47 = vpack.c.bf16 %v423_v40, %v422_v42  ;;  %v410_v48 = vadd.f32 %v409_v46, %v306_v44  ;;  %v569_v40 = vpop.permute.xlu0 %568 }
 0x1df   :  { %v425_v49 = vmax.f32 %v415_v45, 0.0 }
 0x1e0   :  { %v424_v50 = vmax.f32 %v410_v48, 0.0  ;;  %788 = vmatpush3.bf16.msra.mxu0 %v787_v47 }
 0x1e1   :  { %789 = vmatprep.subr.bf16.mxu0 %v833_v14 }
 0x1e2   :  { %v790_v51 = vpack.c.bf16 %v425_v49, %v424_v50 }
 0x1e4   :  { %791 = vmatpush3.bf16.msra.mxu0 %v790_v51 }
 0x1e7   :  { %746 = vmatmul.mubr.msk.f32.vlgmr.msra.gmra.mrb[16].mxu0 %vm433_vm2, %v426_v52 }
 0x2ba   :  { %v503_v54 = vpop.f32.mrb[16].mxu0 }
 0x2bb   :  { %v504_v55 = vadd.f32 %v503_v54, %v431_v53  ;;  %v747_v56 = vpop.f32.mrb[17].mxu0 }
 0x2bd   :  { %v507_v57 = vmax.f32 %v504_v55, -20.0 }
 0x2bf   :  { %v508_v58 = vmin.f32 %v507_v57, 2.0 }
 0x2c1   :  { %v509_v59 = vmul.f32 1.442695, %v508_v58  ;;  %v518_v15 = vsub.f32 %v517_v9, %v508_v58 }
 0x2c3   :  { %800 = vpow2.f32 %v509_v59  ;;  %v608_v19 = vadd.f32 -0.9189385, %v518_v15 }
 0x2cd   :  { %v801_v60 = vpop.eup %800 }
 0x2ce   :  { %v511_v61 = vmul.f32 %v801_v60, %v886_v0 }
 0x2d0   :  { %v513_v62 = vrot.slane %v511_v61, 4 }
 0x2d2   :  { %v515_v63 = vadd.f32 %v513_v62, %v504_v55 }
 0x2d4   :  { %v520_v1 = vand.u32 2147483647, %v515_v63  ;;  %v524_v7 = vmul.f32 -2.0, %v515_v63  ;;  %v530_v13 = vsub.f32 0.6931472, %v515_v63  ;;  %vm553_vm4 = vcmp.ge.f32.partialorder %v515_v63, 0.0 }
 0x2d5   :  { %v554_v28 = vsel %vm553_vm4, 1.0, %v836_v27 }
 0x2d6   :  { %v521_v2 = vmul.f32 -2.0, %v520_v1  ;;  %v525_v10 = vmax.f32 %v524_v7, 0.0 }
 0x2d8   :  { %v522_v3 = vmul.f32 1.442695, %v521_v2 }
 0x2da   :  { %802 = vpow2.f32 %v522_v3 }
 0x2e4   :  { %v803_v4 = vpop.eup %802 }
 0x2e5   :  { %v526_v5 = vadd.f32 1.0, %v803_v4  ;;  %v555_v24 = vsub.f32 1.0, %v803_v4 }
 0x2e7   :  { %804 = vlog2.f32 %v526_v5  ;;  %v556_v30 = vmul.f32 %v555_v24, %v554_v28 }
 0x2e8   :  { %806 = vrcp.f32 %v526_v5 }
 0x2f1   :  { %v805_v8 = vpop.eup %804 }
 0x2f2   :  { %v528_v11 = vmul.f32 0.6931472, %v805_v8  ;;  %v807_v14 = vpop.eup %806 }
 0x2f3   :  { %v550_v18 = vmul.f32 %v807_v14, %v526_v5 }
 0x2f4   :  { %v529_v12 = vadd.f32 %v528_v11, %v525_v10 }
 0x2f5   :  { %v551_v22 = vsub.f32 2.0, %v550_v18 }
 0x2f6   :  { %v531_v16 = vsub.f32 %v530_v13, %v529_v12 }
 0x2f7   :  { %v552_v0 = vmul.f32 %v807_v14, %v551_v22 }
 0x2f8   :  { %v532_v17 = vmul.f32 2.0, %v531_v16 }
 0x2f9   :  { %v557_v33 = vmul.f32 %v556_v30, %v552_v0 }
 0x2fa   :  { %v534_v20 = vrot.slane %v532_v17, 4 }
 0x2fb   :  { %v564_v38 = vmul.f32 %v562_v35, %v557_v33 }
 0x2fc   :  { %v536_v21 = vsub.f32 %v608_v19, %v534_v20 }
 0x2fd   :  { %v571_v42 = vadd.f32 %v569_v40, %v564_v38 }
 0x2fe   :  { %v538_v23 = vrot.slane %v536_v21, 4 }
 0x300   :  { %v541_v25 = vsel %vm540_vm3, %v538_v23, 0.0 }
 0x301   :  { %v542_v26 = vrot.slane %v541_v25, 4 }
 0x303   :  { %v543_v29 = vadd.f32 %v542_v26, %v541_v25 }
 0x305   :  { %v544_v32 = vrot.slane %v543_v29, 2 }
 0x307   :  { %v545_v34 = vadd.f32 %v544_v32, %v543_v29 }
 0x309   :  { %v546_v37 = vrot.slane %v545_v34, 1 }
 0x30b   :  { %v547_v39 = vadd.f32 %v546_v37, %v545_v34 }
 0x30d   :  { %v548_v41 = vadd.f32 0.9189385, %v547_v39 }
 0x30f   :  { %v575_v43 = vsel %vm574_vm5, %v571_v42, %v548_v41 }
 0x310   :  { %576 = vst [vmem:[#allocation2] sm:$0xf] %v575_v43 }
 0x311   :  { %819 = shalt.err (!%p816_p4)
}
 0x312   :  { %s820_s29 = scalar_lea.hbm %s1037_s8, 64 }
 0x313   :  { %p821_p5 = scmp.ne.s32.totalorder %s1037_s8, %s820_s29  ;;  %p824_p6 = scmp.lt.u32.totalorder %s820_s29, %s1037_s8 }
 0x315   :  { %p826_p7 = pnand %p824_p6, %p821_p5 }
 0x317   :  { %829 = shalt.err (!%p826_p7)
}
 0x318   :  { %586 = dma.vmem_to_hbm [thread:$0]  %s584_s25, 64, %s1037_s8, [#allocation3]  }
 0x319   :  { %830 = dma.done.wait [#allocation3], 64  }
 0x31a   :  { %831 = vsyncadd [#allocation3], 4294967232 }
 0x31b   :  { %590 = vsyncpa [#allocation3], 1 }

</bundles_post_ra>
